<compile_context>
chip_gen: v7x
topology: tpu7x:2x2x1
jax: 0.10.0
libtpu: 0.0.40
codegen_flags: <defaults>
</compile_context>

<pallas_src>
import functools
import math

import jax
import jax.numpy as jnp
from jax.experimental import pallas as pl
from jax.experimental.pallas import tpu as pltpu


# ----------------------------- Pallas kernels -----------------------------

def _ln_conv(x_ref, mt_ref, m_ref, w_ref, *, eps, inv_e, n_seg):
    """Per-token LayerNorm + single K=(p*p*E) MXU matmul on one (TM, K) tile.

    x_ref : (1, TM, K) bf16; K laid out as (tap, channel) so every contiguous
            E-chunk is one original pixel (one LayerNorm segment).
    mt_ref: (K, G) bf16 0/1 membership -> segment reductions on the MXU.
    m_ref : (G, K) f32 0/1 membership -> segment broadcast on the VPU
            (replaces the old f32 (TM,G)x(G,K) MXU broadcast matmuls whose
            G=4 contraction was padded to 128/256).
    w_ref : (K, N) bf16 conv matrix with LN gamma folded in.
    Returns (TM, N) f32 accumulator.
    """
    x = x_ref[0]                                                     # (TM, K) bf16
    mt = mt_ref[...]                                                 # (K, G) bf16
    # Segment statistics: two bf16 MXU reductions, f32 accumulation.
    mean = jnp.dot(x, mt, preferred_element_type=jnp.float32) * inv_e      # (TM, G)
    msq = jnp.dot(x * x, mt, preferred_element_type=jnp.float32) * inv_e   # (TM, G)
    # E[x^2]-E[x]^2 with bf16 squares is fine at the validated tolerance for
    # zero-ish-mean embeddings; clamp guards tiny negative variances.
    var = jnp.maximum(msq - mean * mean, 0.0)
    istd = jax.lax.rsqrt(var + eps)                                  # (TM, G), EUP
    shift = -(mean * istd)                                           # (TM, G)
    # Per-segment scale/shift broadcast on the VPU, unrolled over the G taps.
    m = m_ref[...]                                                   # (G, K) f32
    y = None
    for g in range(n_seg):
        contrib = (x * istd[:, g:g + 1] + shift[:, g:g + 1]) * m[g:g + 1, :]
        y = contrib if y is None else y + contrib
    y = y.astype(w_ref.dtype)                                        # bf16 for MXU
    return jnp.dot(y, w_ref[...], preferred_element_type=jnp.float32)  # (TM, N) f32


def _convembed_pos_kernel(x_ref, mt_ref, m_ref, w_ref, pos_ref, o_ref, *,
                          eps, inv_e, n_seg):
    acc = _ln_conv(x_ref, mt_ref, m_ref, w_ref, eps=eps, inv_e=inv_e, n_seg=n_seg)
    o_ref[0] = (acc + pos_ref[...].astype(jnp.float32)).astype(o_ref.dtype)


def _convembed_nopos_kernel(x_ref, mt_ref, m_ref, w_ref, o_ref, *,
                            eps, inv_e, n_seg):
    acc = _ln_conv(x_ref, mt_ref, m_ref, w_ref, eps=eps, inv_e=inv_e, n_seg=n_seg)
    o_ref[0] = acc.astype(o_ref.dtype)


# ----------------------------- parameter prep (one-time) -----------------------------

def prepare_conv_embed_params(params, *, patch_size=2, compute_dtype=jnp.bfloat16):
    """Hoisted out of the per-call path: bf16 embedding table, (K, N) conv
    matrix with LN gamma folded in, 0/1 membership matrices, bf16 pos table."""
    table = params["emb_table"]                  # (vocab, E)
    gamma = params["ln_gamma"]                   # (E,)
    conv_w = params["conv_w"]                    # (N, E*p*p, 1, 1)
    p = patch_size
    E = table.shape[1]
    G = p * p
    K = E * G
    N = conv_w.shape[0]
    # conv input channel c_in = c*p*p + pi*p + pj  ->  matrix row k = (pi*p+pj)*E + c
    w = conv_w.reshape(N, E, p, p)
    w = jnp.transpose(w, (2, 3, 1, 0)).reshape(K, N)
    w = (jnp.tile(gamma, G)[:, None] * w).astype(compute_dtype)
    # TODO(synk): use_bias=True (LN beta + conv bias) would fold into one extra
    #             (1, N) constant add; the default config has no biases.
    seg = jnp.arange(K) // E
    mt = (seg[:, None] == jnp.arange(G)[None, :]).astype(compute_dtype)   # (K, G)
    m_ = (seg[None, :] == jnp.arange(G)[:, None]).astype(jnp.float32)     # (G, K)
    prepared = {"emb_table": table.astype(compute_dtype),
                "w_fused": w, "mt": mt, "m": m_}
    if params.get("pos_table") is not None:
        prepared["pos_table"] = params["pos_table"].astype(compute_dtype)
    return prepared


# ----------------------------- wrapper -----------------------------

def _pick_tile_m(L, stream_bytes_per_row, max_tm, budget_bytes):
    for t in (1024, 512, 256, 128, 64, 32, 16, 8):
        if t <= max_tm and L % t == 0 and t * stream_bytes_per_row <= budget_bytes:
            return t
    start = min(max_tm, L)
    start -= start % 8
    for t in range(start, 7, -8):
        if L % t == 0:
            return t
    return L   # full-extent block (exempt from the (8,128) rule)


def conv_embed_forward(input_ids, prepared, *, patch_size=2,
                       use_position_embeddings=True, layer_norm_eps=1e-5,
                       out_dtype=jnp.bfloat16, max_tile_m=512,
                       stream_vmem_budget=12 << 20):
    """ConvEmbed.forward (inference; use_bias=False, layer_norm_embedddings=False)."""
    B, S = input_ids.shape
    H = W = int(round(math.sqrt(S)))
    p = patch_size
    table = prepared["emb_table"]
    w = prepared["w_fused"]
    mt = prepared["mt"]
    m_ = prepared["m"]
    K, N = w.shape
    G = mt.shape[1]
    E = K // G
    Hp, Wp = H // p, W // p
    L = Hp * Wp

    # 1) Permute the 4-byte ids (not the E*2-byte embedding rows) into
    #    pixel-unshuffle order: the gather then directly emits the
    #    channels-last (B, L, K) patch layout (k = (pi*p + pj)*E + c).
    ids = input_ids.reshape(B, Hp, p, Wp, p)
    ids = jnp.transpose(ids, (0, 1, 3, 2, 4)).reshape(-1)
    x = jnp.take(table, ids, axis=0).reshape(B, L, K)

    cdt = table.dtype
    bx = jnp.dtype(cdt).itemsize
    bo = jnp.dtype(out_dtype).itemsize
    has_pos = use_position_embeddings and ("pos_table" in prepared)
    bpos = jnp.dtype(cdt).itemsize if has_pos else 0

    # Tile size from the double-buffered streaming working set.
    stream_per_row = 2 * (K * bx + N * bo + N * bpos)
    tm = _pick_tile_m(L, stream_per_row, max_tile_m, stream_vmem_budget)

    # Grid: spatial tiles outer, batch inner -> the pos block (spatial-only
    # index) is revisited for B consecutive steps and DMA'd only L//tm times.
    grid = (L // tm, B)

    x_spec = pl.BlockSpec((1, tm, K), lambda s, b: (b, s, 0))
    mt_spec = pl.BlockSpec((K, G), lambda s, b: (0, 0))
    m_spec = pl.BlockSpec((G, K), lambda s, b: (0, 0))
    w_spec = pl.BlockSpec((K, N), lambda s, b: (0, 0))     # resident across tiles
    o_spec = pl.BlockSpec((1, tm, N), lambda s, b: (b, s, 0))
    # TODO(synk): single-buffer the constant-index operands (w/mt/m) via
    #             pipeline_mode=pl.Buffered(1) once verified on all targets.

    resident_bytes = 2 * (K * N * jnp.dtype(w.dtype).itemsize
                          + K * G * jnp.dtype(mt.dtype).itemsize
                          + G * K * 4)
    # Scoped-VMEM limit from the actual working set (+ headroom for the
    # kernel's full-tile f32 temporaries); never below 32 MiB so it is >= the
    # scoped default on every generation, capped well under v7x's 64 MiB.
    vmem_limit = tm * stream_per_row + resident_bytes + (16 << 20)
    vmem_limit = int(min(max(vmem_limit, 32 << 20), 56 << 20))

    flops = 2 * B * L * K * (N + 2 * G) + 4 * B * L * K * G
    bytes_accessed = (B * L * K * bx
                      + K * N * jnp.dtype(w.dtype).itemsize
                      + B * L * N * bo
                      + (L * N * bpos if has_pos else 0))
    common = dict(
        out_shape=jax.ShapeDtypeStruct((B, L, N), out_dtype),
        grid=grid,
        out_specs=o_spec,
        compiler_params=pltpu.CompilerParams(
            dimension_semantics=("parallel", "parallel"),
            vmem_limit_bytes=vmem_limit),
        cost_estimate=pl.CostEstimate(
            flops=flops, transcendentals=B * L * G,
            bytes_accessed=bytes_accessed),
    )

    if has_pos:
        # position_ids == arange(L), exactly as in the reference forward.
        pos = prepared["pos_table"][:L]
        pos_spec = pl.BlockSpec((tm, N), lambda s, b: (s, 0))
        kern = functools.partial(_convembed_pos_kernel, eps=layer_norm_eps,
                                 inv_e=1.0 / E, n_seg=G)
        return pl.pallas_call(
            kern, in_specs=[x_spec, mt_spec, m_spec, w_spec, pos_spec],
            **common)(x, mt, m_, w, pos)

    kern = functools.partial(_convembed_nopos_kernel, eps=layer_norm_eps,
                             inv_e=1.0 / E, n_seg=G)
    return pl.pallas_call(
        kern, in_specs=[x_spec, mt_spec, m_spec, w_spec], **common)(x, mt, m_, w)
    # TODO(synk): layer_norm_embedddings=True (Norm2D) path not implemented --
    #             it is off by default in the reference config.


# ----------------------------- pure-JAX reference -----------------------------

def _ref_forward(input_ids, params, *, patch_size, use_position_embeddings, eps):
    B, S = input_ids.shape
    H = W = int(round(math.sqrt(S)))
    p = patch_size
    table, gamma, conv_w = params["emb_table"], params["ln_gamma"], params["conv_w"]
    emb = table[input_ids.reshape(B, H, W)]                       # (B, H, W, E)
    mean = emb.mean(-1, keepdims=True)
    var = emb.var(-1, keepdims=True)                              # biased
    emb = (emb - mean) * jax.lax.rsqrt(var + eps) * gamma
    x = jnp.transpose(emb, (0, 3, 1, 2))                          # NCHW
    if p > 1:                                                     # PixelUnshuffle
        Bc, C, Hh, Ww = x.shape
        x = x.reshape(Bc, C, Hh // p, p, Ww // p, p)
        x = jnp.transpose(x, (0, 1, 3, 5, 2, 4)).reshape(Bc, C * p * p, Hh // p, Ww // p)
    out = jax.lax.conv_general_dilated(
        x, conv_w, (1, 1), ((0, 0), (0, 0)),
        dimension_numbers=("NCHW", "OIHW", "NCHW"))
    hidden = conv_w.shape[0]
    out = jnp.transpose(out, (0, 2, 3, 1)).reshape(B, -1, hidden)
    if use_position_embeddings:
        out = out + params["pos_table"][:out.shape[1]][None]
    return out


# ----------------------------- main -----------------------------

if __name__ == "__main__":
    key = jax.random.PRNGKey(0)
    k1, k2, k3, k4, k5 = jax.random.split(key, 5)

    B, S = 2, 256                    # 16x16 token grid
    VOCAB, E, HIDDEN, P = 1000, 32, 128, 2
    MAX_POS = 256                    # >= (16/2)*(16/2) = 64

    input_ids = jax.random.randint(k1, (B, S), 0, VOCAB, dtype=jnp.int32)
    params = {
        "emb_table": jax.random.normal(k2, (VOCAB, E), jnp.float32),
        "ln_gamma": 1.0 + 0.1 * jax.random.normal(k3, (E,), jnp.float32),
        "conv_w": jax.random.normal(k4, (HIDDEN, E * P * P, 1, 1), jnp.float32)
                  / jnp.sqrt(E * P * P),
        "pos_table": 0.02 * jax.random.normal(k5, (MAX_POS, HIDDEN), jnp.float32),
    }

    prepared = prepare_conv_embed_params(params, patch_size=P)
    fwd = jax.jit(functools.partial(conv_embed_forward, patch_size=P,
                                    use_position_embeddings=True))
    out = fwd(input_ids, prepared)
    jax.block_until_ready(out)

    ref = _ref_forward(input_ids, params, patch_size=P,
                       use_position_embeddings=True, eps=1e-5)
    L = S // (P * P)
    assert out.shape == (B, L, HIDDEN), out.shape
    assert out.dtype == jnp.bfloat16, out.dtype
    err = float(jnp.max(jnp.abs(out.astype(jnp.float32) - ref)))
    scale = float(jnp.max(jnp.abs(ref))) + 1e-6
    # bf16 activations / weights / output bound the error well inside 2e-2.
    assert err / scale < 2e-2, f"mismatch vs reference: abs={err}, scale={scale}"

    print("KERNEL_OK")
</pallas_src>

<mosaic_0001>
module attributes {stable_mosaic.version = 11 : i64} {
  func.func @_convembed_pos_kernel(%arg0: i32, %arg1: i32, %arg2: memref<1x64x128xbf16, #tpu.memory_space<vmem>>, %arg3: memref<128x4xbf16, #tpu.memory_space<vmem>>, %arg4: memref<4x128xf32, #tpu.memory_space<vmem>>, %arg5: memref<128x128xbf16, #tpu.memory_space<vmem>>, %arg6: memref<64x128xbf16, #tpu.memory_space<vmem>>, %arg7: memref<1x64x128xbf16, #tpu.memory_space<vmem>>) attributes {dimension_semantics = [#tpu.dimension_semantics<parallel>, #tpu.dimension_semantics<parallel>], iteration_bounds = array<i64: 1, 2>, scalar_prefetch = 0 : i64, scratch_operands = 0 : i64, tpu.core_type = #tpu.core_type<tc>, window_params = [{transform_indices = @transform_0, window_bounds = array<i64: 1, 64, 128>}, {pipeline_mode = #tpu.pipeline_mode<synchronous>, transform_indices = @transform_1, window_bounds = array<i64: 128, 4>}, {pipeline_mode = #tpu.pipeline_mode<synchronous>, transform_indices = @transform_2, window_bounds = array<i64: 4, 128>}, {pipeline_mode = #tpu.pipeline_mode<synchronous>, transform_indices = @transform_3, window_bounds = array<i64: 128, 128>}, {transform_indices = @transform_4, window_bounds = array<i64: 64, 128>}, {transform_indices = @transform_5, window_bounds = array<i64: 1, 64, 128>}]} {
    %c0 = arith.constant 0 : index
    %c0_0 = arith.constant 0 : index
    %c0_1 = arith.constant 0 : index
    %0 = vector.load %arg2[%c0, %c0_0, %c0_1] : memref<1x64x128xbf16, #tpu.memory_space<vmem>>, vector<1x64x128xbf16>
    %1 = vector.shape_cast %0 : vector<1x64x128xbf16> to vector<64x128xbf16>
    %c0_2 = arith.constant 0 : index
    %c0_3 = arith.constant 0 : index
    %2 = vector.load %arg3[%c0_2, %c0_3] : memref<128x4xbf16, #tpu.memory_space<vmem>>, vector<128x4xbf16>
    %cst = arith.constant dense<0.000000e+00> : vector<64x4xf32>
    %3 = tpu.matmul %1, %2, %cst {dimension_numbers = #tpu.dot_dimension_numbers<[1], [0], [0], [1], [0, 0, 1, 1], [], []>} : vector<64x128xbf16>, vector<128x4xbf16>, vector<64x4xf32> -> vector<64x4xf32>
    %cst_4 = arith.constant 3.125000e-02 : f32
    %4 = vector.broadcast %cst_4 : f32 to vector<64x4xf32>
    %5 = arith.mulf %3, %4 : vector<64x4xf32>
    %6 = arith.mulf %1, %1 : vector<64x128xbf16>
    %cst_5 = arith.constant dense<0.000000e+00> : vector<64x4xf32>
    %7 = tpu.matmul %6, %2, %cst_5 {dimension_numbers = #tpu.dot_dimension_numbers<[1], [0], [0], [1], [0, 0, 1, 1], [], []>} : vector<64x128xbf16>, vector<128x4xbf16>, vector<64x4xf32> -> vector<64x4xf32>
    %cst_6 = arith.constant 3.125000e-02 : f32
    %8 = vector.broadcast %cst_6 : f32 to vector<64x4xf32>
    %9 = arith.mulf %7, %8 : vector<64x4xf32>
    %10 = arith.mulf %5, %5 : vector<64x4xf32>
    %11 = arith.subf %9, %10 : vector<64x4xf32>
    %cst_7 = arith.constant 0.000000e+00 : f32
    %12 = vector.broadcast %cst_7 : f32 to vector<64x4xf32>
    %13 = arith.maximumf %11, %12 : vector<64x4xf32>
    %cst_8 = arith.constant 9.99999974E-6 : f32
    %14 = vector.broadcast %cst_8 : f32 to vector<64x4xf32>
    %15 = arith.addf %13, %14 : vector<64x4xf32>
    %16 = math.rsqrt %15 : vector<64x4xf32>
    %17 = arith.mulf %5, %16 : vector<64x4xf32>
    %cst_9 = arith.constant 0.000000e+00 : f32
    %18 = vector.broadcast %cst_9 : f32 to vector<64x4xf32>
    %19 = arith.subf %18, %17 : vector<64x4xf32>
    %c0_10 = arith.constant 0 : index
    %c0_11 = arith.constant 0 : index
    %20 = vector.load %arg4[%c0_10, %c0_11] : memref<4x128xf32, #tpu.memory_space<vmem>>, vector<4x128xf32>
    %21 = vector.extract_strided_slice %16 {offsets = [0, 0], sizes = [64, 1], strides = [1, 1]} : vector<64x4xf32> to vector<64x1xf32>
    %22 = arith.extf %1 : vector<64x128xbf16> to vector<64x128xf32>
    %23 = vector.broadcast %21 : vector<64x1xf32> to vector<64x128xf32>
    %24 = arith.mulf %22, %23 : vector<64x128xf32>
    %25 = vector.extract_strided_slice %19 {offsets = [0, 0], sizes = [64, 1], strides = [1, 1]} : vector<64x4xf32> to vector<64x1xf32>
    %26 = vector.broadcast %25 : vector<64x1xf32> to vector<64x128xf32>
    %27 = arith.addf %24, %26 : vector<64x128xf32>
    %28 = vector.extract_strided_slice %20 {offsets = [0, 0], sizes = [1, 128], strides = [1, 1]} : vector<4x128xf32> to vector<1x128xf32>
    %29 = vector.broadcast %28 : vector<1x128xf32> to vector<64x128xf32>
    %30 = arith.mulf %27, %29 : vector<64x128xf32>
    %31 = vector.extract_strided_slice %16 {offsets = [0, 1], sizes = [64, 1], strides = [1, 1]} : vector<64x4xf32> to vector<64x1xf32>
    %32 = arith.extf %1 : vector<64x128xbf16> to vector<64x128xf32>
    %33 = vector.broadcast %31 : vector<64x1xf32> to vector<64x128xf32>
    %34 = arith.mulf %32, %33 : vector<64x128xf32>
    %35 = vector.extract_strided_slice %19 {offsets = [0, 1], sizes = [64, 1], strides = [1, 1]} : vector<64x4xf32> to vector<64x1xf32>
    %36 = vector.broadcast %35 : vector<64x1xf32> to vector<64x128xf32>
    %37 = arith.addf %34, %36 : vector<64x128xf32>
    %38 = vector.extract_strided_slice %20 {offsets = [1, 0], sizes = [1, 128], strides = [1, 1]} : vector<4x128xf32> to vector<1x128xf32>
    %39 = vector.broadcast %38 : vector<1x128xf32> to vector<64x128xf32>
    %40 = arith.mulf %37, %39 : vector<64x128xf32>
    %41 = arith.addf %30, %40 : vector<64x128xf32>
    %42 = vector.extract_strided_slice %16 {offsets = [0, 2], sizes = [64, 1], strides = [1, 1]} : vector<64x4xf32> to vector<64x1xf32>
    %43 = arith.extf %1 : vector<64x128xbf16> to vector<64x128xf32>
    %44 = vector.broadcast %42 : vector<64x1xf32> to vector<64x128xf32>
    %45 = arith.mulf %43, %44 : vector<64x128xf32>
    %46 = vector.extract_strided_slice %19 {offsets = [0, 2], sizes = [64, 1], strides = [1, 1]} : vector<64x4xf32> to vector<64x1xf32>
    %47 = vector.broadcast %46 : vector<64x1xf32> to vector<64x128xf32>
    %48 = arith.addf %45, %47 : vector<64x128xf32>
    %49 = vector.extract_strided_slice %20 {offsets = [2, 0], sizes = [1, 128], strides = [1, 1]} : vector<4x128xf32> to vector<1x128xf32>
    %50 = vector.broadcast %49 : vector<1x128xf32> to vector<64x128xf32>
    %51 = arith.mulf %48, %50 : vector<64x128xf32>
    %52 = arith.addf %41, %51 : vector<64x128xf32>
    %53 = vector.extract_strided_slice %16 {offsets = [0, 3], sizes = [64, 1], strides = [1, 1]} : vector<64x4xf32> to vector<64x1xf32>
    %54 = arith.extf %1 : vector<64x128xbf16> to vector<64x128xf32>
    %55 = vector.broadcast %53 : vector<64x1xf32> to vector<64x128xf32>
    %56 = arith.mulf %54, %55 : vector<64x128xf32>
    %57 = vector.extract_strided_slice %19 {offsets = [0, 3], sizes = [64, 1], strides = [1, 1]} : vector<64x4xf32> to vector<64x1xf32>
    %58 = vector.broadcast %57 : vector<64x1xf32> to vector<64x128xf32>
    %59 = arith.addf %56, %58 : vector<64x128xf32>
    %60 = vector.extract_strided_slice %20 {offsets = [3, 0], sizes = [1, 128], strides = [1, 1]} : vector<4x128xf32> to vector<1x128xf32>
    %61 = vector.broadcast %60 : vector<1x128xf32> to vector<64x128xf32>
    %62 = arith.mulf %59, %61 : vector<64x128xf32>
    %63 = arith.addf %52, %62 : vector<64x128xf32>
    %64 = arith.truncf %63 : vector<64x128xf32> to vector<64x128xbf16>
    %c0_12 = arith.constant 0 : index
    %c0_13 = arith.constant 0 : index
    %65 = vector.load %arg5[%c0_12, %c0_13] : memref<128x128xbf16, #tpu.memory_space<vmem>>, vector<128x128xbf16>
    %cst_14 = arith.constant dense<0.000000e+00> : vector<64x128xf32>
    %66 = tpu.matmul %64, %65, %cst_14 {dimension_numbers = #tpu.dot_dimension_numbers<[1], [0], [0], [1], [0, 0, 1, 1], [], []>} : vector<64x128xbf16>, vector<128x128xbf16>, vector<64x128xf32> -> vector<64x128xf32>
    %c0_15 = arith.constant 0 : index
    %c0_16 = arith.constant 0 : index
    %67 = vector.load %arg6[%c0_15, %c0_16] : memref<64x128xbf16, #tpu.memory_space<vmem>>, vector<64x128xbf16>
    %68 = arith.extf %67 : vector<64x128xbf16> to vector<64x128xf32>
    %69 = arith.addf %66, %68 : vector<64x128xf32>
    %70 = arith.truncf %69 : vector<64x128xf32> to vector<64x128xbf16>
    %c0_17 = arith.constant 0 : index
    %c0_18 = arith.constant 0 : index
    %c0_19 = arith.constant 0 : index
    %71 = vector.load %arg7[%c0_17, %c0_18, %c0_19] : memref<1x64x128xbf16, #tpu.memory_space<vmem>>, vector<1x64x128xbf16>
    %72 = vector.shape_cast %71 : vector<1x64x128xbf16> to vector<64x128xbf16>
    %73 = vector.shape_cast %70 : vector<64x128xbf16> to vector<1x64x128xbf16>
    tpu.vector_store %arg7[%c0_17, %c0_18, %c0_19], %73 {strides = array<i32>} : memref<1x64x128xbf16, #tpu.memory_space<vmem>>, vector<1x64x128xbf16>,
    return
  }
  func.func @transform_0(%arg0: i32, %arg1: i32) -> (i32, i32, i32) {
    %c0_i32 = arith.constant 0 : i32
    %c0_i32_0 = arith.constant 0 : i32
    return %arg1, %arg0, %c0_i32 : i32, i32, i32
  }
  func.func @transform_1(%arg0: i32, %arg1: i32) -> (i32, i32) {
    %c0_i32 = arith.constant 0 : i32
    %c0_i32_0 = arith.constant 0 : i32
    %c0_i32_1 = arith.constant 0 : i32
    return %c0_i32, %c0_i32_0 : i32, i32
  }
  func.func @transform_2(%arg0: i32, %arg1: i32) -> (i32, i32) {
    %c0_i32 = arith.constant 0 : i32
    %c0_i32_0 = arith.constant 0 : i32
    %c0_i32_1 = arith.constant 0 : i32
    return %c0_i32, %c0_i32_0 : i32, i32
  }
  func.func @transform_3(%arg0: i32, %arg1: i32) -> (i32, i32) {
    %c0_i32 = arith.constant 0 : i32
    %c0_i32_0 = arith.constant 0 : i32
    %c0_i32_1 = arith.constant 0 : i32
    return %c0_i32, %c0_i32_0 : i32, i32
  }
  func.func @transform_4(%arg0: i32, %arg1: i32) -> (i32, i32) {
    %c0_i32 = arith.constant 0 : i32
    %c0_i32_0 = arith.constant 0 : i32
    return %arg0, %c0_i32 : i32, i32
  }
  func.func @transform_5(%arg0: i32, %arg1: i32) -> (i32, i32, i32) {
    %c0_i32 = arith.constant 0 : i32
    %c0_i32_0 = arith.constant 0 : i32
    return %arg1, %arg0, %c0_i32 : i32, i32, i32
  }
}

</mosaic_0001>

<bundles_post_ra>
// kernel: conv_embed_forward.1
= control target key start
LH: loop header
LB: loop body
LE: loop exit
PB: predicated region body
PF: predicated region fallthrough
CT: control target
= control target key end

     0   :  { %10 = vsyncpa [#allocation3], 0  ;;  %s2274_s0 = inlined_call_operand.vmem [shape: bf16[2,64,128], index: 0, kind: input, shape index: {}]   ;;  %s2275_s1 = inlined_call_operand.vmem [shape: bf16[128,4], index: 1, kind: input, shape index: {}]   ;;  %s2276_s2 = inlined_call_operand.vmem [shape: f32[4,128], index: 2, kind: input, shape index: {}]   ;;  %s2277_s3 = inlined_call_operand.vmem [shape: bf16[128,128], index: 3, kind: input, shape index: {}]   ;;  %s2278_s4 = inlined_call_operand.vmem [shape: bf16[64,128], index: 4, kind: input, shape index: {}]   ;;  %s2279_s5 = inlined_call_operand.hbm [shape: bf16[2,64,128], index: 5, kind: output, shape index: {}]  }
   0x1   :  { %12 = vsyncpa [#allocation3 + $0x1], 0  ;;  %s1821_s18 = smov 0   ;;  %s1823_s19 = smov 0  }
   0x2   :  { %s1825_s20 = smov 0   ;;  %s1827_s21 = smov 0  }
   0x3   :  { %s1829_s22 = smov 0   ;;  %s1831_s23 = smov 0  }
   0x4 LB: > { %s1323_s24 = sadd.s32 4294967295, %s1782_s23   ;;  %s1324_s25 = sadd.s32 4294967294, %s1782_s23   ;;  %s1782_s23 = sphi %s1831_s23, %s18_s23   ;;  %s1778_s22 = sphi %s1829_s22, %s2286_s22   ;;  %s1774_s21 = sphi %s1827_s21, %s2285_s21   ;;  %s1770_s20 = sphi %s1825_s20, %s2284_s20   ;;  %s1766_s19 = sphi %s1823_s19, %s2283_s19   ;;  %s1762_s18 = sphi %s1821_s18, %s2282_s18  }
   0x5   : > { %s27_s26 = sadd.s32 1, %s1778_s22  ;;  %s156_s27 = sadd.s32 1, %s1770_s20 }
   0x6   : > { %p28_p0 = scmp.ge.s32.totalorder %s27_s26, 2  ;;  %p166_p1 = scmp.ne.s32.totalorder %s1770_s20, %s1766_s19 }
   0x7   : > { %p167_p2 = scmp.eq.s32.totalorder %s1323_s24, 1  ;;  %p172_p3 = scmp.ne.s32.totalorder %s1766_s19, %s1762_s18 }
   0x8   : > { %s2288_s26 = smov (%p28_p0, %s27_s26), 0  ;;  %p173_p5 = scmp.eq.s32.totalorder %s1324_s25, 1 }
   0x9   : > { %p1861_p4 = por %p167_p2, %p166_p1  ;;  %s151_s29 = ssub.s32 %s1778_s22, %s2288_s26 }
   0xa   : > { %p1328_p6 = scmp.ge.s32.totalorder %s1782_s23, 1  ;;  %p154_p7 = scmp.eq.s32.totalorder %s151_s29, 0 }
   0xb   : > { %p1868_p8 = por %p173_p5, %p172_p3  ;;  %p222_p9 = scmp.lt.s32.totalorder %s1782_s23, 3 }
   0xc   : > { %s1874_s6 = scalar_select %p154_p7, %s1770_s20, %s156_s27  }
   0xd   : > { %p223_p10 = pnand %p1328_p6, %p222_p9 }
   0xe   : > { %v1668_v0 = vld [vmem:[%s2275_s1] sm:$0xff] (!%p223_p10)   ;;  %p260_p11 = scmp.lt.s32.totalorder (!%p223_p10), %s1774_s21, 1  ;;  %v1669_v1 = vld [vmem:[%s2275_s1 + $0x8] sm:$0xff] (!%p223_p10)   ;;  %v1670_v2 = vld [vmem:[%s2275_s1 + $0x10] sm:$0xff] (!%p223_p10)   ;;  %v1784_v32 = vmov (!%p223_p10), 1   ;;  %v1785_v33 = vmov (!%p223_p10), 0  }
   0xf   : > { %226 = sbr.rel (%p223_p10) target bundleno = 833 (0x341), region = 40  ;;  %1457 = vmatprep.subr.bf16.mxu0 (!%p223_p10), %v1668_v0  ;;  %1481 = vmatprep.subr.bf16.mxu1 (!%p223_p10), %v1668_v0  ;;  %v1671_v3 = vld [vmem:[%s2275_s1 + $0x18] sm:$0xff] (!%p223_p10)   ;;  %v1672_v8 = vld [vmem:[%s2275_s1 + $0x20] sm:$0xff] (!%p223_p10)   ;;  %v1673_v11 = vld [vmem:[%s2275_s1 + $0x28] sm:$0xff] (!%p223_p10)   ;;  %s256_s27 = sand.u32 (!%p223_p10), 1, %s1766_s19  }
  0x10   : > { %1458 = vmatpush3.bf16.msra.mxu0 (!%p223_p10), %v1668_v0  ;;  %1482 = vmatpush3.bf16.msra.mxu1 (!%p223_p10), %v1668_v0  ;;  %v1674_v12 = vld [vmem:[%s2275_s1 + $0x30] sm:$0xff] (!%p223_p10)   ;;  %v1675_v15 = vld [vmem:[%s2275_s1 + $0x38] sm:$0xff] (!%p223_p10)   ;;  %s1329_s29 = sshll.u32 (!%p223_p10), %s256_s27, 5  ;;  %s1378_s13 = sshll.u32 (!%p223_p10), %s1774_s21, 9 }
  0x11   : > { %1459 = vmatprep.subr.bf16.mxu0 (!%p223_p10), %v1669_v1  ;;  %1483 = vmatprep.subr.bf16.mxu1 (!%p223_p10), %v1669_v1  ;;  %s258_s7 = scalar_lea.vmem (!%p223_p10), [#allocation2], %s1329_s29  ;;  %s2224_s16 = scalar_lea.hbm (!%p223_p10), %s2279_s5, %s1378_s13 }
  0x12   : > { %1607 = vset.pattern.permute.xlu0 (!%p223_p10), %v1784_v32  ;;  %1606 = vset.pattern.permute.xlu1 (!%p223_p10), %v1785_v33  ;;  %s1229_s12 = sshll.u32 (!%p223_p10), %s258_s7, 4  ;;  %s1788_s24 = smov (!%p223_p10), [#allocation2]   ;;  %s2219_s12 = int_to_ptr.vmem [resolvable:$true] %s1229_s12 }
  0x13   : > { %s1708_s25 = sshll.u32 (!%p223_p10), %s1788_s24, 4  ;;  %s1709_s25 = int_to_ptr.vmem [resolvable:$false] %s1708_s25 }
  0x14   : > { %1460 = vmatpush3.bf16.msra.mxu0 (!%p223_p10), %v1669_v1  ;;  %1484 = vmatpush3.bf16.msra.mxu1 (!%p223_p10), %v1669_v1  ;;  %s1710_s29 = scalar_lea.vmem (!%p223_p10), %s1709_s25, 1024  ;;  %p1711_p1 = scmp.lt.s32.totalorder (!%p223_p10), %s2219_s12, %s1709_s25 }
  0x15   : > { %1461 = vmatprep.subr.bf16.mxu0 (!%p223_p10), %v1670_v2  ;;  %1485 = vmatprep.subr.bf16.mxu1 (!%p223_p10), %v1670_v2 }
  0x16   : > { %s261_s11 = scalar_select %p260_p11, %s1774_s21, 1 }
  0x17   : > { %s2228_s21 = scalar_lea.sflag [#allocation3], %s256_s27 }
  0x18   : > { %s1369_s14 = sshll.u32 %s261_s11, 5  ;;  %1462 = vmatpush3.bf16.msra.mxu0 %v1670_v2  ;;  %1486 = vmatpush3.bf16.msra.mxu1 %v1670_v2 }
  0x19   : > { %s1890_s17 = scalar_lea.vmem %s2274_s0, %s1369_s14  ;;  %1463 = vmatprep.subr.bf16.mxu0 %v1671_v3  ;;  %1487 = vmatprep.subr.bf16.mxu1 %v1671_v3 }
  0x1a   : > { %v1896_v4 = vld [vmem:[%s1890_s17] sm:$0xf]  ;;  %v1899_v5 = vld [vmem:[%s1890_s17 + $0x4] sm:$0xf]  ;;  %v1917_v13 = vld [vmem:[%s1890_s17 + $0x8] sm:$0xf] }
  0x1b   : > { %v1332_v6 = vcombine.low %v1896_v4, %v1899_v5  ;;  %v446_v7 = vmul.bf16 %v1896_v4, %v1896_v4  ;;  %v447_v9 = vmul.bf16 %v1899_v5, %v1899_v5  ;;  %v1920_v14 = vld [vmem:[%s1890_s17 + $0xc] sm:$0xf]  ;;  %v1926_v16 = vld [vmem:[%s1890_s17 + $0x10] sm:$0xf]  ;;  %v1929_v17 = vld [vmem:[%s1890_s17 + $0x14] sm:$0xf]  ;;  %v448_v18 = vmul.bf16 %v1917_v13, %v1917_v13 }
  0x1c   : > { %1464 = vmatpush3.bf16.msra.mxu0 %v1671_v3  ;;  %1488 = vmatpush3.bf16.msra.mxu1 %v1671_v3  ;;  %v449_v19 = vmul.bf16 %v1920_v14, %v1920_v14  ;;  %v450_v20 = vmul.bf16 %v1926_v16, %v1926_v16  ;;  %v451_v21 = vmul.bf16 %v1929_v17, %v1929_v17  ;;  %v1944_v25 = vld [vmem:[%s1890_s17 + $0x18] sm:$0xf]  ;;  %v1947_v26 = vld [vmem:[%s1890_s17 + $0x1c] sm:$0xf]  ;;  %s1704_s17 = scalar_lea.vmem %s2219_s12, 512 }
  0x1d   : > { %v1344_v10 = vcombine.low %v446_v7, %v447_v9  ;;  %1473 = vmatprep.mubr.bf16.mxu0 %v1332_v6  ;;  %1465 = vmatprep.subr.bf16.mxu0 %v1672_v8  ;;  %v1333_v22 = vcombine.low %v1917_v13, %v1920_v14  ;;  %v1334_v24 = vcombine.low %v1926_v16, %v1929_v17  ;;  %p1705_p12 = scmp.ne.s32.totalorder %s2219_s12, %s1704_s17  ;;  %p1712_p2 = scmp.lt.s32.totalorder %s1710_s29, %s1704_s17 }
  0x1e   : > { %1489 = vmatprep.subr.bf16.mxu1 %v1672_v8  ;;  %v1345_v23 = vcombine.low %v448_v18, %v449_v19  ;;  %v1346_v27 = vcombine.low %v450_v20, %v451_v21  ;;  %v452_v28 = vmul.bf16 %v1944_v25, %v1944_v25  ;;  %v453_v29 = vmul.bf16 %v1947_v26, %v1947_v26 }
  0x1f   : > { %1497 = vmatprep.mubr.bf16.mxu1 %v1344_v10  ;;  %v1335_v30 = vcombine.low %v1944_v25, %v1947_v26  ;;  %p1706_p13 = pnand %p1705_p12, %p1861_p4  ;;  %p1713_p3 = por %p1712_p2, %p1711_p1 }
  0x20   : > { %1466 = vmatpush3.bf16.msra.mxu0 %v1672_v8  ;;  %1490 = vmatpush3.bf16.msra.mxu1 %v1672_v8  ;;  %v1347_v31 = vcombine.low %v452_v28, %v453_v29 }
  0x21   : > { %1467 = vmatprep.subr.bf16.mxu0 %v1673_v11  ;;  %1491 = vmatprep.subr.bf16.mxu1 %v1673_v11  ;;  %p1707_p0 = pneg %p1706_p13 }
  0x23   : > { %p1714_p5 = pnand %p1713_p3, %p1707_p0 }
  0x24   : > { %1468 = vmatpush3.bf16.msra.mxu0 %v1673_v11  ;;  %1492 = vmatpush3.bf16.msra.mxu1 %v1673_v11 }
  0x25   : > { %1469 = vmatprep.subr.bf16.mxu0 %v1674_v12  ;;  %1493 = vmatprep.subr.bf16.mxu1 %v1674_v12 }
  0x28   : > { %1470 = vmatpush3.bf16.msra.mxu0 %v1674_v12  ;;  %1494 = vmatpush3.bf16.msra.mxu1 %v1674_v12 }
  0x29   : > { %1471 = vmatprep.subr.bf16.mxu0 %v1675_v15  ;;  %1495 = vmatprep.subr.bf16.mxu1 %v1675_v15 }
  0x2c   : > { %1472 = vmatpush3.bf16.msra.mxu0 %v1675_v15  ;;  %1496 = vmatpush3.bf16.msra.mxu1 %v1675_v15 }
  0x2f   : > { %1474 = vmatmul.mubr.bf16.vlgmr.msra.gmra.mrb[0].mxu0 %v1333_v22  ;;  %1498 = vmatmul.mubr.bf16.vlgmr.msra.gmra.mrb[0].mxu1 %v1345_v23 }
  0x30   : > { %1477 = vmatprep.mubr.bf16.mxu0 %v1334_v24  ;;  %1501 = vmatprep.mubr.bf16.mxu1 %v1346_v27 }
  0x37   : > { %1478 = vmatmul.mubr.bf16.gmra.mrb[4].mxu0 %v1335_v30  ;;  %1502 = vmatmul.mubr.bf16.gmra.mrb[4].mxu1 %v1347_v31 }
 0x102   : > { %v1475_v34 = vpop.f32.mrb[0].mxu0  ;;  %v1499_v35 = vpop.f32.mrb[0].mxu1 }
 0x103   : > { %v1957_v36 = vmul.f32 0.03125, %v1475_v34  ;;  %v545_v37 = vmul.f32 0.03125, %v1499_v35  ;;  %v407_v38 = vpop.f32.mrb[1].mxu0  ;;  %v512_v39 = vpop.f32.mrb[1].mxu1 }
 0x104   : > { %v1959_v40 = vmul.f32 0.03125, %v407_v38  ;;  %v543_v41 = vmul.f32 0.03125, %v512_v39  ;;  %v1476_v42 = vpop.f32.mrb[2].mxu0  ;;  %v1500_v43 = vpop.f32.mrb[2].mxu1 }
 0x105   : > { %v553_v44 = vmul.f32 %v1957_v36, %v1957_v36  ;;  %v1963_v45 = vmul.f32 0.03125, %v1476_v42  ;;  %v410_v46 = vpop.f32.mrb[3].mxu0  ;;  %v515_v47 = vpop.f32.mrb[3].mxu1  ;;  %v546_v52 = vmul.f32 0.03125, %v1500_v43 }
 0x106   : > { %v551_v48 = vmul.f32 %v1959_v40, %v1959_v40  ;;  %v1967_v49 = vmul.f32 0.03125, %v410_v46  ;;  %v544_v55 = vmul.f32 0.03125, %v515_v47 }
 0x107   : > { %v561_v50 = vsub.f32 %v545_v37, %v553_v44  ;;  %v554_v51 = vmul.f32 %v1963_v45, %v1963_v45 }
 0x108   : > { %v559_v53 = vsub.f32 %v543_v41, %v551_v48  ;;  %v552_v54 = vmul.f32 %v1967_v49, %v1967_v49 }
 0x109   : > { %v569_v56 = vmax.f32 %v561_v50, 0.0  ;;  %v562_v57 = vsub.f32 %v546_v52, %v554_v51 }
 0x10a   : > { %v567_v58 = vmax.f32 %v559_v53, 0.0  ;;  %v560_v59 = vsub.f32 %v544_v55, %v552_v54  ;;  %v1479_v60 = vpop.f32.mrb[4].mxu0  ;;  %v1503_v61 = vpop.f32.mrb[4].mxu1 }
 0x10b   : > { %v577_v62 = vadd.f32 1e-05, %v569_v56  ;;  %v570_v63 = vmax.f32 %v562_v57, 0.0  ;;  %v444_v0 = vmul.f32 0.03125, %v1479_v60  ;;  %v423_v1 = vpop.f32.mrb[5].mxu0  ;;  %v549_v2 = vmul.f32 0.03125, %v1503_v61 }
 0x10c   : > { %v575_v3 = vadd.f32 1e-05, %v567_v58  ;;  %v568_v6 = vmax.f32 %v560_v59, 0.0  ;;  %v442_v7 = vmul.f32 0.03125, %v423_v1  ;;  %v1480_v8 = vpop.f32.mrb[6].mxu0  ;;  %v528_v9 = vpop.f32.mrb[5].mxu1 }
 0x10d   : > { %1688 = vrsqrt.f32 %v577_v62  ;;  %v578_v10 = vadd.f32 1e-05, %v570_v63  ;;  %v557_v11 = vmul.f32 %v444_v0, %v444_v0  ;;  %v445_v12 = vmul.f32 0.03125, %v1480_v8  ;;  %v426_v15 = vpop.f32.mrb[7].mxu0  ;;  %v1504_v18 = vpop.f32.mrb[6].mxu1  ;;  %v1680_v1 = vld [vmem:[%s2277_s3] sm:$0xff]  }
 0x10e   : > { %1690 = vrsqrt.f32 %v575_v3  ;;  %v576_v19 = vadd.f32 1e-05, %v568_v6  ;;  %v555_v20 = vmul.f32 %v442_v7, %v442_v7  ;;  %v443_v21 = vmul.f32 0.03125, %v426_v15  ;;  %v531_v22 = vpop.f32.mrb[7].mxu1  ;;  %1505 = vmatprep.subr.bf16.mxu0 %v1680_v1  ;;  %1529 = vmatprep.subr.bf16.mxu1 %v1680_v1  ;;  %v1682_v6 = vld [vmem:[%s2277_s3 + $0x10] sm:$0xff]   ;;  %v1684_v8 = vld [vmem:[%s2277_s3 + $0x20] sm:$0xff]  }
 0x10f   : > { %1692 = vrsqrt.f32 %v578_v10  ;;  %v558_v23 = vmul.f32 %v445_v12, %v445_v12  ;;  %v565_v24 = vsub.f32 %v549_v2, %v557_v11  ;;  %v547_v27 = vmul.f32 0.03125, %v528_v9  ;;  %1506 = vmatpush3.bf16.msra.mxu0 %v1680_v1  ;;  %v1681_v2 = vld [vmem:[%s2277_s3 + $0x8] sm:$0xff]   ;;  %1537 = vmatpush3.bf16.msra.mxu1 %v1680_v1  ;;  %v1686_v10 = vld [vmem:[%s2277_s3 + $0x30] sm:$0xff]   ;;  %v1687_v11 = vld [vmem:[%s2277_s3 + $0x38] sm:$0xff]  }
 0x110   : > { %1694 = vrsqrt.f32 %v576_v19  ;;  %v556_v28 = vmul.f32 %v443_v21, %v443_v21  ;;  %v550_v29 = vmul.f32 0.03125, %v1504_v18  ;;  %v548_v30 = vmul.f32 0.03125, %v531_v22  ;;  %1507 = vmatprep.subr.bf16.mxu0 %v1681_v2  ;;  %1530 = vmatprep.subr.bf16.mxu1 %v1681_v2  ;;  %v1685_v9 = vld [vmem:[%s2277_s3 + $0x28] sm:$0xff]  }
 0x111   : > { %v573_v31 = vmax.f32 %v565_v24, 0.0  ;;  %v563_v34 = vsub.f32 %v547_v27, %v555_v20  ;;  %v1786_v56 = vmov 2   ;;  %v1787_v57 = vmov 3  }
 0x112   : > { %v566_v35 = vsub.f32 %v550_v29, %v558_v23  ;;  %v564_v37 = vsub.f32 %v548_v30, %v556_v28 }
 0x113   : > { %v581_v38 = vadd.f32 1e-05, %v573_v31  ;;  %v571_v39 = vmax.f32 %v563_v34, 0.0  ;;  %1508 = vmatpush3.bf16.msra.mxu0 %v1681_v2  ;;  %1538 = vmatpush3.bf16.msra.mxu1 %v1681_v2 }
 0x114   : > { %v574_v41 = vmax.f32 %v566_v35, 0.0  ;;  %v572_v42 = vmax.f32 %v564_v37, 0.0  ;;  %1509 = vmatprep.subr.bf16.mxu0 %v1682_v6  ;;  %1531 = vmatprep.subr.bf16.mxu1 %v1682_v6 }
 0x115   : > { %1696 = vrsqrt.f32 %v581_v38  ;;  %v579_v43 = vadd.f32 1e-05, %v571_v39 }
 0x116   : > { %v582_v44 = vadd.f32 1e-05, %v574_v41  ;;  %v580_v46 = vadd.f32 1e-05, %v572_v42 }
 0x117   : > { %v1689_v47 = vpop.eup %1688  ;;  %1698 = vrsqrt.f32 %v579_v43  ;;  %1510 = vmatpush3.bf16.msra.mxu0 %v1682_v6  ;;  %1539 = vmatpush3.bf16.msra.mxu1 %v1682_v6 }
 0x118   : > { %v1691_v48 = vpop.eup %1690  ;;  %733 = vperm.xlu0 %1607, %v1689_v47   ;;  %628 = vperm.xlu1 %1606, %v1689_v47   ;;  %1700 = vrsqrt.f32 %v582_v44  ;;  %v593_v50 = vmul.f32 %v1689_v47, %v1957_v36 }
 0x119   : > { %v1693_v51 = vpop.eup %1692  ;;  %1702 = vrsqrt.f32 %v580_v46  ;;  %v591_v52 = vmul.f32 %v1691_v48, %v1959_v40 }
 0x11a   : > { %v1695_v53 = vpop.eup %1694  ;;  %v594_v54 = vmul.f32 %v1693_v51, %v1963_v45  ;;  %v601_v62 = vsub.f32 0.0, %v593_v50 }
 0x11b   : > { %v1977_v55 = vmul.f32 %v1695_v53, %v1967_v49  ;;  %v599_v63 = vsub.f32 0.0, %v591_v52  ;;  %v712_v52 = vlaneseq }
 0x11c   : > { %1608 = vset.pattern.permute.xlu0 %v1786_v56  ;;  %1609 = vset.pattern.permute.xlu1 %v1787_v57 }
 0x11d   : > { %833 = vperm.xlu0 %1608, %v1689_v47   ;;  %933 = vperm.xlu1 %1609, %v1689_v47   ;;  %v600_v3 = vsub.f32 0.0, %v1977_v55 }
 0x11f   : > { %v1981_v58 = vpop.eup %1696 }
 0x120   : > { %v1984_v36 = vmul.f32 %v1981_v58, %v444_v0  ;;  %v602_v0 = vsub.f32 0.0, %v594_v54  ;;  %v713_v54 = vshrl.u32 %v712_v52, 7 }
 0x121   : > { %v1986_v40 = vpop.eup %1698  ;;  %1610 = vset.pattern.permute.xlu0 %v1785_v33  ;;  %1612 = vset.pattern.permute.xlu1 %v1786_v56 }
 0x122   : > { %v1990_v45 = vpop.eup %1700  ;;  %825 = vperm.xlu1 %1612, %v1691_v48   ;;  %618 = vperm.xlu0 %1610, %v1691_v48   ;;  %v1993_v49 = vmul.f32 %v1986_v40, %v442_v7  ;;  %v1683_v7 = vld [vmem:[%s2277_s3 + $0x18] sm:$0xff]   ;;  %v605_v19 = vsub.f32 0.0, %v1984_v36  ;;  %v806_v36 = vsub.s32 1, %v713_v54 }
 0x123   : > { %v1995_v59 = vpop.eup %1702  ;;  %v1998_v60 = vmul.f32 %v1990_v45, %v445_v12  ;;  %1511 = vmatprep.subr.bf16.mxu0 %v1683_v7  ;;  %1532 = vmatprep.subr.bf16.mxu1 %v1683_v7 }
 0x124   : > { %v2001_v61 = vmul.f32 %v1995_v59, %v443_v21  ;;  %1512 = vmatpush3.bf16.msra.mxu0 %v1683_v7  ;;  %1540 = vmatpush3.bf16.msra.mxu1 %v1683_v7  ;;  %v603_v12 = vsub.f32 0.0, %v1993_v49  ;;  %v1006_v49 = vsub.s32 3, %v713_v54 }
 0x125   : > { %1513 = vmatprep.subr.bf16.mxu0 %v1684_v8  ;;  %1533 = vmatprep.subr.bf16.mxu1 %v1684_v8  ;;  %v2075_v15 = vsub.f32 0.0, %v1998_v60 }
 0x126   : > { %1613 = vset.pattern.permute.xlu1 %v1787_v57  ;;  %1611 = vset.pattern.permute.xlu0 %v1784_v32  ;;  %v604_v18 = vsub.f32 0.0, %v2001_v61 }
 0x127   : > { %925 = vperm.xlu1 %1613, %v1691_v48   ;;  %725 = vperm.xlu0 %1611, %v1691_v48  }
 0x128   : > { %1514 = vmatpush3.bf16.msra.mxu0 %v1684_v8  ;;  %1541 = vmatpush3.bf16.msra.mxu1 %v1684_v8 }
 0x129   : > { %1515 = vmatprep.subr.bf16.mxu0 %v1685_v9  ;;  %1534 = vmatprep.subr.bf16.mxu1 %v1685_v9 }
 0x12b   : > { %1615 = vset.pattern.permute.xlu1 %v1784_v32  ;;  %1614 = vset.pattern.permute.xlu0 %v1785_v33 }
 0x12c   : > { %737 = vperm.xlu1 %1615, %v1693_v51   ;;  %633 = vperm.xlu0 %1614, %v1693_v51  }
 0x12d   : > { %1516 = vmatpush3.bf16.msra.mxu0 %v1685_v9  ;;  %1542 = vmatpush3.bf16.msra.mxu1 %v1685_v9 }
 0x12e   : > { %1517 = vmatprep.subr.bf16.mxu0 %v1686_v10  ;;  %1535 = vmatprep.subr.bf16.mxu1 %v1686_v10 }
 0x130   : > { %1616 = vset.pattern.permute.xlu1 %v1786_v56  ;;  %1617 = vset.pattern.permute.xlu0 %v1787_v57 }
 0x131   : > { %837 = vperm.xlu1 %1616, %v1693_v51   ;;  %937 = vperm.xlu0 %1617, %v1693_v51  }
 0x132   : > { %1518 = vmatpush3.bf16.msra.mxu0 %v1686_v10  ;;  %1543 = vmatpush3.bf16.msra.mxu1 %v1686_v10 }
 0x133   : > { %1519 = vmatprep.subr.bf16.mxu0 %v1687_v11  ;;  %1536 = vmatprep.subr.bf16.mxu1 %v1687_v11 }
 0x135   : > { %1619 = vset.pattern.permute.xlu1 %v1784_v32  ;;  %1618 = vset.pattern.permute.xlu0 %v1785_v33 }
 0x136   : > { %729 = vperm.xlu1 %1619, %v1695_v53   ;;  %623 = vperm.xlu0 %1618, %v1695_v53  }
 0x137   : > { %1520 = vmatpush3.bf16.msra.mxu0 %v1687_v11  ;;  %1544 = vmatpush3.bf16.msra.mxu1 %v1687_v11 }
 0x13a   : > { %773 = vperm.xlu1 %1619, %v601_v62   ;;  %1620 = vset.pattern.permute.xlu0 %v1786_v56 }
 0x13b   : > { %829 = vperm.xlu0 %1620, %v1695_v53  }
 0x13e   : > { %1625 = vset.pattern.permute.xlu1 %v1785_v33 }
 0x13f   : > { %666 = vperm.xlu1 %1625, %v599_v63   ;;  %1621 = vset.pattern.permute.xlu0 %v1787_v57 }
 0x140   : > { %929 = vperm.xlu0 %1621, %v1695_v53  }
 0x143   : > { %1627 = vset.pattern.permute.xlu1 %v1786_v56 }
 0x144   : > { %865 = vperm.xlu1 %1627, %v599_v63   ;;  %1622 = vset.pattern.permute.xlu0 %v1785_v33 }
 0x145   : > { %676 = vperm.xlu0 %1622, %v601_v62  }
 0x148   : > { %1629 = vset.pattern.permute.xlu1 %v1785_v33 }
 0x149   : > { %681 = vperm.xlu1 %1629, %v602_v0   ;;  %1623 = vset.pattern.permute.xlu0 %v1786_v56 }
 0x14a   : > { %873 = vperm.xlu0 %1623, %v601_v62  }
 0x14d   : > { %1631 = vset.pattern.permute.xlu1 %v1786_v56 }
 0x14e   : > { %877 = vperm.xlu1 %1631, %v602_v0   ;;  %1624 = vset.pattern.permute.xlu0 %v1787_v57 }
 0x14f   : > { %973 = vperm.xlu0 %1624, %v601_v62  }
 0x152   : > { %1632 = vset.pattern.permute.xlu1 %v1787_v57 }
 0x153   : > { %977 = vperm.xlu1 %1632, %v602_v0   ;;  %1626 = vset.pattern.permute.xlu0 %v1784_v32 }
 0x154   : > { %765 = vperm.xlu0 %1626, %v599_v63  }
 0x157   : > { %1634 = vset.pattern.permute.xlu1 %v1784_v32 }
 0x158   : > { %1628 = vset.pattern.permute.xlu0 %v1787_v57  ;;  %769 = vperm.xlu1 %1634, %v600_v3  }
 0x159   : > { %965 = vperm.xlu0 %1628, %v599_v63   ;;  %v609_v63 = vunpack.c.l.bf16 %v1899_v5 }
 0x15c   : > { %1636 = vset.pattern.permute.xlu1 %v1787_v57 }
 0x15d   : > { %1630 = vset.pattern.permute.xlu0 %v1784_v32  ;;  %969 = vperm.xlu1 %1636, %v600_v3  }
 0x15e   : > { %777 = vperm.xlu0 %1630, %v602_v0  }
 0x161   : > { %1637 = vset.pattern.permute.xlu1 %v1785_v33 }
 0x162   : > { %1633 = vset.pattern.permute.xlu0 %v1785_v33  ;;  %648 = vperm.xlu1 %1637, %v1981_v58  }
 0x163   : > { %671 = vperm.xlu0 %1633, %v600_v3  }
 0x166   : > { %1638 = vset.pattern.permute.xlu1 %v1784_v32 }
 0x167   : > { %1635 = vset.pattern.permute.xlu0 %v1786_v56  ;;  %749 = vperm.xlu1 %1638, %v1981_v58  }
 0x168   : > { %869 = vperm.xlu0 %1635, %v600_v3  }
 0x16b   : > { %1639 = vset.pattern.permute.xlu1 %v1786_v56 }
 0x16c   : > { %1646 = vset.pattern.permute.xlu0 %v1784_v32  ;;  %849 = vperm.xlu1 %1639, %v1981_v58  }
 0x16d   : > { %753 = vperm.xlu0 %1646, %v1990_v45  }
 0x170   : > { %1640 = vset.pattern.permute.xlu1 %v1787_v57 }
 0x171   : > { %949 = vperm.xlu1 %1640, %v1981_v58   ;;  %1647 = vset.pattern.permute.xlu0 %v1786_v56 }
 0x172   : > { %853 = vperm.xlu0 %1647, %v1990_v45  }
 0x175   : > { %1641 = vset.pattern.permute.xlu1 %v1785_v33 }
 0x176   : > { %638 = vperm.xlu1 %1641, %v1986_v40   ;;  %1650 = vset.pattern.permute.xlu0 %v1784_v32 }
 0x177   : > { %745 = vperm.xlu0 %1650, %v1995_v59  }
 0x17a   : > { %1642 = vset.pattern.permute.xlu1 %v1784_v32 }
 0x17b   : > { %741 = vperm.xlu1 %1642, %v1986_v40   ;;  %1659 = vset.pattern.permute.xlu0 %v1787_v57 }
 0x17c   : > { %981 = vperm.xlu0 %1659, %v603_v12  }
 0x17f   : > { %1643 = vset.pattern.permute.xlu1 %v1786_v56 }
 0x180   : > { %841 = vperm.xlu1 %1643, %v1986_v40   ;;  %1660 = vset.pattern.permute.xlu0 %v1785_v33 }
 0x181   : > { %701 = vperm.xlu0 %1660, %v2075_v15  }
 0x184   : > { %1644 = vset.pattern.permute.xlu1 %v1787_v57 }
 0x185   : > { %941 = vperm.xlu1 %1644, %v1986_v40   ;;  %1662 = vset.pattern.permute.xlu0 %v1786_v56  ;;  %v714_v40 = vsub.s32 0, %v713_v54 }
 0x186   : > { %893 = vperm.xlu0 %1662, %v2075_v15  }
 0x189   : > { %1645 = vset.pattern.permute.xlu1 %v1785_v33 }
 0x18a   : > { %653 = vperm.xlu1 %1645, %v1990_v45   ;;  %1664 = vset.pattern.permute.xlu0 %v1784_v32 }
 0x18b   : > { %785 = vperm.xlu0 %1664, %v604_v18  }
 0x18e   : > { %1648 = vset.pattern.permute.xlu1 %v1787_v57 }
 0x18f   : > { %953 = vperm.xlu1 %1648, %v1990_v45   ;;  %1665 = vset.pattern.permute.xlu0 %v1786_v56  ;;  %v906_v45 = vsub.s32 2, %v713_v54 }
 0x190   : > { %885 = vperm.xlu0 %1665, %v604_v18  }
 0x193   : > { %1649 = vset.pattern.permute.xlu1 %v1785_v33 }
 0x194   : > { %643 = vperm.xlu1 %1649, %v1995_v59   ;;  %1667 = vset.pattern.permute.xlu0 %v1787_v57 }
 0x195   : > { %989 = vperm.xlu0 %1667, %v605_v19  }
 0x197   : > { %v2095_v20 = vpop.permute.xlu0 %733  ;;  %v2097_v21 = vpop.permute.xlu1 %628 }
 0x198   : > { %1651 = vset.pattern.permute.xlu1 %v1786_v56 }
 0x199   : > { %845 = vperm.xlu1 %1651, %v1995_v59  }
 0x19c   : > { %v2101_v22 = vpop.permute.xlu0 %833  ;;  %v2103_v23 = vpop.permute.xlu1 %933 }
 0x19d   : > { %1652 = vset.pattern.permute.xlu1 %v1787_v57 }
 0x19e   : > { %945 = vperm.xlu1 %1652, %v1995_v59   ;;  %v610_v59 = vunpack.c.l.bf16 %v1917_v13 }
 0x1a0   : > { %v758_v13 = vmul.f32 %v2095_v20, %v610_v59  ;;  %v658_v10 = vmul.f32 %v2097_v21, %v610_v59  ;;  %v858_v5 = vmul.f32 %v2101_v22, %v610_v59 }
 0x1a1   : > { %v2107_v24 = vpop.permute.xlu1 %825  ;;  %v619_v27 = vpop.permute.xlu0 %618 }
 0x1a2   : > { %1653 = vset.pattern.permute.xlu1 %v1785_v33 }
 0x1a3   : > { %696 = vperm.xlu1 %1653, %v605_v19  }
 0x1a6   : > { %v2110_v28 = vpop.permute.xlu1 %925  ;;  %v726_v29 = vpop.permute.xlu0 %725 }
 0x1a7   : > { %1654 = vset.pattern.permute.xlu1 %v1784_v32 }
 0x1a8   : > { %789 = vperm.xlu1 %1654, %v605_v19  }
 0x1ab   : > { %v738_v30 = vpop.permute.xlu1 %737  ;;  %v634_v31 = vpop.permute.xlu0 %633 }
 0x1ac   : > { %1655 = vset.pattern.permute.xlu1 %v1786_v56 }
 0x1ad   : > { %889 = vperm.xlu1 %1655, %v605_v19  }
 0x1b0   : > { %v838_v34 = vpop.permute.xlu1 %837  ;;  %v2114_v35 = vpop.permute.xlu0 %937 }
 0x1b1   : > { %1656 = vset.pattern.permute.xlu1 %v1785_v33 }
 0x1b2   : > { %686 = vperm.xlu1 %1656, %v603_v12  }
 0x1b5   : > { %v730_v37 = vpop.permute.xlu1 %729  ;;  %v624_v38 = vpop.permute.xlu0 %623 }
 0x1b6   : > { %1657 = vset.pattern.permute.xlu1 %v1784_v32 }
 0x1b7   : > { %781 = vperm.xlu1 %1657, %v603_v12  }
 0x1b9   : > { %v2118_v39 = vpop.permute.xlu1 %773 }
 0x1ba   : > { %v2120_v41 = vpop.permute.xlu0 %829  ;;  %v798_v54 = vadd.f32 %v2118_v39, %v758_v13 }
 0x1bb   : > { %1658 = vset.pattern.permute.xlu1 %v1786_v56  ;;  %v611_v56 = vunpack.c.l.bf16 %v1920_v14 }
 0x1bc   : > { %881 = vperm.xlu1 %1658, %v603_v12   ;;  %v958_v12 = vmul.f32 %v2103_v23, %v610_v59 }
 0x1bd   : > { %v759_v61 = vmul.f32 %v738_v30, %v611_v56  ;;  %v659_v0 = vmul.f32 %v634_v31, %v611_v56  ;;  %v757_v31 = vmul.f32 %v730_v37, %v609_v63  ;;  %v959_v23 = vmul.f32 %v2114_v35, %v611_v56 }
 0x1be   : > { %v667_v42 = vpop.permute.xlu1 %666 }
 0x1bf   : > { %v2123_v43 = vpop.permute.xlu0 %929 }
 0x1c0   : > { %1661 = vset.pattern.permute.xlu1 %v1784_v32 }
 0x1c1   : > { %793 = vperm.xlu1 %1661, %v2075_v15  }
 0x1c3   : > { %v866_v44 = vpop.permute.xlu1 %865 }
 0x1c4   : > { %v677_v46 = vpop.permute.xlu0 %676 }
 0x1c5   : > { %1663 = vset.pattern.permute.xlu1 %v1785_v33  ;;  %v608_v33 = vunpack.c.l.bf16 %v1896_v4  ;;  %v706_v21 = vadd.f32 %v677_v46, %v658_v10 }
 0x1c6   : > { %691 = vperm.xlu1 %1663, %v604_v18  }
 0x1c7   : > { %v756_v60 = vmul.f32 %v726_v29, %v608_v33  ;;  %v656_v1 = vmul.f32 %v619_v27, %v608_v33  ;;  %v856_v29 = vmul.f32 %v2107_v24, %v608_v33  ;;  %v956_v30 = vmul.f32 %v2110_v28, %v608_v33 }
 0x1c8   : > { %v682_v47 = vpop.permute.xlu1 %681  ;;  %v857_v24 = vmul.f32 %v2120_v41, %v609_v63  ;;  %v957_v33 = vmul.f32 %v2123_v43, %v609_v63 }
 0x1c9   : > { %v874_v48 = vpop.permute.xlu0 %873  ;;  %v707_v8 = vadd.f32 %v682_v47, %v659_v0  ;;  %v704_v11 = vadd.f32 %v667_v42, %v656_v1 }
 0x1ca   : > { %1666 = vset.pattern.permute.xlu1 %v1787_v57  ;;  %v607_v57 = vld [vmem:[%s2276_s2] sm:$0xf]  ;;  %v898_v28 = vadd.f32 %v874_v48, %v858_v5 }
 0x1cb   : > { %985 = vperm.xlu1 %1666, %v604_v18   ;;  %v2139_v2 = vrot.slane %v607_v57, %v806_v36  ;;  %v2141_v6 = vrot.slane %v607_v57, %v714_v40  ;;  %v2143_v7 = vrot.slane %v607_v57, %v906_v45  ;;  %v2145_v9 = vrot.slane %v607_v57, %v1006_v49 }
 0x1cc   : > { %v657_v18 = vmul.f32 %v624_v38, %v609_v63  ;;  %v896_v38 = vadd.f32 %v866_v44, %v856_v29 }
 0x1cd   : > { %v878_v50 = vpop.permute.xlu1 %877  ;;  %v719_v22 = vmul.f32 %v2141_v6, %v707_v8  ;;  %v718_v40 = vmul.f32 %v2141_v6, %v706_v21  ;;  %v810_v43 = vmul.f32 %v2139_v2, %v798_v54  ;;  %v614_v54 = vunpack.c.l.bf16 %v1944_v25 }
 0x1ce   : > { %v2129_v51 = vpop.permute.xlu0 %973  ;;  %v908_v39 = vmul.f32 %v2143_v7, %v896_v38 }
 0x1cf   : > { %993 = vperm.xlu1 %1666, %v2075_v15   ;;  %v859_v15 = vmul.f32 %v838_v34, %v611_v56  ;;  %v716_v34 = vmul.f32 %v2141_v6, %v704_v11  ;;  %v998_v44 = vadd.f32 %v2129_v51, %v958_v12  ;;  %v818_v51 = vadd.f32 %v810_v43, %v718_v40 }
 0x1d1   : > { %v899_v42 = vadd.f32 %v878_v50, %v859_v15 }
 0x1d2   : > { %v978_v53 = vpop.permute.xlu1 %977 }
 0x1d3   : > { %v766_v32 = vpop.permute.xlu0 %765  ;;  %v911_v35 = vmul.f32 %v2143_v7, %v899_v42 }
 0x1d4   : > { %v796_v4 = vadd.f32 %v766_v32, %v756_v60 }
 0x1d6   : > { %v808_v20 = vmul.f32 %v2139_v2, %v796_v4 }
 0x1d7   : > { %v770_v55 = vpop.permute.xlu1 %769 }
 0x1d8   : > { %v966_v58 = vpop.permute.xlu0 %965  ;;  %v797_v32 = vadd.f32 %v770_v55, %v757_v31  ;;  %v816_v36 = vadd.f32 %v808_v20, %v716_v34  ;;  %v999_v55 = vadd.f32 %v978_v53, %v959_v23  ;;  %v1010_v53 = vmul.f32 %v2145_v9, %v998_v44 }
 0x1d9   : > { %v996_v46 = vadd.f32 %v966_v58, %v956_v30  ;;  %v910_v58 = vmul.f32 %v2143_v7, %v898_v28 }
 0x1da   : > { %v809_v41 = vmul.f32 %v2139_v2, %v797_v32  ;;  %v916_v59 = vadd.f32 %v908_v39, %v816_v36  ;;  %v1011_v0 = vmul.f32 %v2145_v9, %v999_v55 }
 0x1db   : > { %v1008_v60 = vmul.f32 %v2145_v9, %v996_v46  ;;  %v918_v4 = vadd.f32 %v910_v58, %v818_v51 }
 0x1dc   : > { %v970_v62 = vpop.permute.xlu1 %969 }
 0x1dd   : > { %v778_v14 = vpop.permute.xlu0 %777  ;;  %v997_v48 = vadd.f32 %v970_v62, %v957_v33  ;;  %v1016_v8 = vadd.f32 %v1008_v60, %v916_v59  ;;  %v1018_v10 = vadd.f32 %v1010_v53, %v918_v4  ;;  %v612_v60 = vunpack.c.l.bf16 %v1926_v16 }
 0x1de   : > { %v799_v3 = vadd.f32 %v778_v14, %v759_v61 }
 0x1df   : > { %v1009_v62 = vmul.f32 %v2145_v9, %v997_v48 }
 0x1e0   : > { %v811_v19 = vmul.f32 %v2139_v2, %v799_v3 }
 0x1e1   : > { %v2152_v27 = vpop.permute.xlu1 %648 }
 0x1e2   : > { %v672_v47 = vpop.permute.xlu0 %671  ;;  %v819_v37 = vadd.f32 %v811_v19, %v719_v22  ;;  %v662_v28 = vmul.f32 %v2152_v27, %v614_v54 }
 0x1e3   : > { %v705_v52 = vadd.f32 %v672_v47, %v657_v18 }
 0x1e4   : > { %v919_v49 = vadd.f32 %v911_v35, %v819_v37 }
 0x1e5   : > { %v717_v57 = vmul.f32 %v2141_v6, %v705_v52 }
 0x1e6   : > { %v750_v50 = vpop.permute.xlu1 %749  ;;  %v1019_v3 = vadd.f32 %v1011_v0, %v919_v49 }
 0x1e7   : > { %v870_v56 = vpop.permute.xlu0 %869  ;;  %v817_v61 = vadd.f32 %v809_v41, %v717_v57  ;;  %v762_v33 = vmul.f32 %v750_v50, %v614_v54 }
 0x1e8   : > { %v897_v45 = vadd.f32 %v870_v56, %v857_v24  ;;  %v1025_v12 = vpack.c.bf16 %v1019_v3, %v1018_v10 }
 0x1ea   : > { %v909_v63 = vmul.f32 %v2143_v7, %v897_v45 }
 0x1eb   : > { %v850_v14 = vpop.permute.xlu1 %849 }
 0x1ec   : > { %v917_v1 = vadd.f32 %v909_v63, %v817_v61  ;;  %v754_v18 = vpop.permute.xlu0 %753  ;;  %v862_v55 = vmul.f32 %v850_v14, %v614_v54  ;;  %v613_v61 = vunpack.c.l.bf16 %v1929_v17  ;;  %v615_v63 = vunpack.c.l.bf16 %v1947_v26 }
 0x1ee   : > { %v1017_v13 = vadd.f32 %v1009_v62, %v917_v1  ;;  %v763_v3 = vmul.f32 %v754_v18, %v615_v63 }
 0x1f0   : > { %v950_v5 = vpop.permute.xlu1 %949  ;;  %v1024_v11 = vpack.c.bf16 %v1017_v13, %v1016_v8 }
 0x1f1   : > { %v854_v30 = vpop.permute.xlu0 %853  ;;  %v962_v56 = vmul.f32 %v950_v5, %v614_v54 }
 0x1f2   : > { %1521 = vmatprep.mubr.bf16.mxu0 %v1024_v11 }
 0x1f3   : > { %1522 = vmatmul.mubr.bf16.vlgmr.msra.gmra.mrb[8].mxu0 %v1025_v12 }
 0x1f5   : > { %v639_v15 = vpop.permute.xlu1 %638 }
 0x1f6   : > { %v746_v20 = vpop.permute.xlu0 %745  ;;  %v660_v0 = vmul.f32 %v639_v15, %v612_v60 }
 0x1f7   : > { %v761_v1 = vmul.f32 %v746_v20, %v613_v61  ;;  %v863_v20 = vmul.f32 %v854_v30, %v615_v63 }
 0x1fa   : > { %v742_v19 = vpop.permute.xlu1 %741 }
 0x1fb   : > { %v982_v21 = vpop.permute.xlu0 %981  ;;  %v760_v51 = vmul.f32 %v742_v19, %v612_v60 }
 0x1ff   : > { %v842_v29 = vpop.permute.xlu1 %841 }
 0x200   : > { %v702_v42 = vpop.permute.xlu0 %701  ;;  %v860_v14 = vmul.f32 %v842_v29, %v612_v60 }
 0x204   : > { %v942_v31 = vpop.permute.xlu1 %941 }
 0x205   : > { %v2178_v23 = vpop.permute.xlu0 %893  ;;  %v960_v12 = vmul.f32 %v942_v31, %v612_v60 }
 0x209   : > { %v654_v47 = vpop.permute.xlu1 %653 }
 0x20a   : > { %v786_v32 = vpop.permute.xlu0 %785  ;;  %v663_v8 = vmul.f32 %v654_v47, %v615_v63 }
 0x20b   : > { %v801_v5 = vadd.f32 %v786_v32, %v761_v1 }
 0x20c   : > { %v711_v19 = vadd.f32 %v702_v42, %v663_v8  ;;  %v903_v42 = vadd.f32 %v2178_v23, %v863_v20 }
 0x20d   : > { %v813_v18 = vmul.f32 %v2139_v2, %v801_v5 }
 0x20e   : > { %v2176_v22 = vpop.permute.xlu1 %953 }
 0x20f   : > { %v886_v37 = vpop.permute.xlu0 %885 }
 0x213   : > { %v644_v52 = vpop.permute.xlu1 %643 }
 0x214   : > { %v990_v40 = vpop.permute.xlu0 %989  ;;  %v661_v11 = vmul.f32 %v644_v52, %v613_v61 }
 0x215   : > { %v1002_v48 = vadd.f32 %v990_v40, %v962_v56 }
 0x217   : > { %v1014_v27 = vmul.f32 %v2145_v9, %v1002_v48 }
 0x218   : > { %v846_v34 = vpop.permute.xlu1 %845 }
 0x219   : > { %v861_v4 = vmul.f32 %v846_v34, %v613_v61  ;;  %v1000_v34 = vadd.f32 %v982_v21, %v960_v12 }
 0x21b   : > { %v1012_v40 = vmul.f32 %v2145_v9, %v1000_v34 }
 0x21d   : > { %v946_v38 = vpop.permute.xlu1 %945 }
 0x21e   : > { %v961_v32 = vmul.f32 %v946_v38, %v613_v61 }
 0x222   : > { %v697_v24 = vpop.permute.xlu1 %696 }
 0x223   : > { %v710_v36 = vadd.f32 %v697_v24, %v662_v28  ;;  %v901_v24 = vadd.f32 %v886_v37, %v861_v4 }
 0x225   : > { %v722_v35 = vmul.f32 %v2141_v6, %v710_v36  ;;  %v913_v28 = vmul.f32 %v2143_v7, %v901_v24  ;;  %v723_v36 = vmul.f32 %v2141_v6, %v711_v19 }
 0x227   : > { %v790_v46 = vpop.permute.xlu1 %789 }
 0x228   : > { %v802_v57 = vadd.f32 %v790_v46, %v762_v33 }
 0x22a   : > { %v814_v44 = vmul.f32 %v2139_v2, %v802_v57 }
 0x22c   : > { %v822_v39 = vadd.f32 %v814_v44, %v722_v35  ;;  %v890_v41 = vpop.permute.xlu1 %889  ;;  %v963_v35 = vmul.f32 %v2176_v22, %v615_v63  ;;  %v915_v44 = vmul.f32 %v2143_v7, %v903_v42  ;;  %v1415_v22 = vld [vmem:[%s2278_s4 + $0x8] sm:$0xff]  }
 0x22d   : > { %v902_v45 = vadd.f32 %v890_v41, %v862_v55 }
 0x22f   : > { %v914_v25 = vmul.f32 %v2143_v7, %v902_v45 }
 0x231   : > { %v922_v43 = vadd.f32 %v914_v25, %v822_v39  ;;  %v687_v50 = vpop.permute.xlu1 %686  ;;  %v1385_v25 = vunpack.c.l.bf16 %v1415_v22 }
 0x232   : > { %v708_v13 = vadd.f32 %v687_v50, %v660_v0 }
 0x233   : > { %v1022_v58 = vadd.f32 %v1014_v27, %v922_v43  ;;  %v1386_v27 = vunpack.c.h.bf16 %v1415_v22 }
 0x234   : > { %v720_v15 = vmul.f32 %v2141_v6, %v708_v13 }
 0x236   : > { %v782_v49 = vpop.permute.xlu1 %781 }
 0x237   : > { %v800_v62 = vadd.f32 %v782_v49, %v760_v51 }
 0x239   : > { %v812_v16 = vmul.f32 %v2139_v2, %v800_v62  ;;  %v1416_v62 = vld [vmem:[%s2278_s4 + $0x10] sm:$0xff]  }
 0x23a   : > { %v1389_v8 = vunpack.c.l.bf16 %v1416_v62  ;;  %v1390_v13 = vunpack.c.h.bf16 %v1416_v62 }
 0x23b   : > { %v882_v59 = vpop.permute.xlu1 %881  ;;  %v820_v52 = vadd.f32 %v812_v16, %v720_v15 }
 0x23c   : > { %v900_v10 = vadd.f32 %v882_v59, %v860_v14  ;;  %v1417_v14 = vld [vmem:[%s2278_s4 + $0x18] sm:$0xff]  }
 0x23d   : > { %v1393_v1 = vunpack.c.l.bf16 %v1417_v14  ;;  %v1394_v4 = vunpack.c.h.bf16 %v1417_v14 }
 0x23e   : > { %v912_v29 = vmul.f32 %v2143_v7, %v900_v10  ;;  %v1380_v7 = vld [vmem:[%s2278_s4] sm:$0xff]  }
 0x23f   : > { %v1381_v50 = vunpack.c.l.bf16 %v1380_v7  ;;  %v1382_v49 = vunpack.c.h.bf16 %v1380_v7 }
 0x240   : > { %v794_v53 = vpop.permute.xlu1 %793  ;;  %v920_v46 = vadd.f32 %v912_v29, %v820_v52 }
 0x241   : > { %v803_v54 = vadd.f32 %v794_v53, %v763_v3 }
 0x242   : > { %v1020_v39 = vadd.f32 %v1012_v40, %v920_v46 }
 0x243   : > { %v815_v31 = vmul.f32 %v2139_v2, %v803_v54 }
 0x245   : > { %v692_v17 = vpop.permute.xlu1 %691  ;;  %v823_v21 = vadd.f32 %v815_v31, %v723_v36 }
 0x246   : > { %v709_v26 = vadd.f32 %v692_v17, %v661_v11 }
 0x247   : > { %v923_v23 = vadd.f32 %v915_v44, %v823_v21 }
 0x248   : > { %v721_v47 = vmul.f32 %v2141_v6, %v709_v26 }
 0x24a   : > { %v821_v33 = vadd.f32 %v813_v18, %v721_v47  ;;  %v986_v37 = vpop.permute.xlu1 %985 }
 0x24b   : > { %v1001_v57 = vadd.f32 %v986_v37, %v961_v32 }
 0x24c   : > { %v921_v30 = vadd.f32 %v913_v28, %v821_v33 }
 0x24d   : > { %v1013_v38 = vmul.f32 %v2145_v9, %v1001_v57 }
 0x24e   : > { %v994_v2 = vpop.permute.xlu1 %993 }
 0x24f   : > { %v1021_v55 = vadd.f32 %v1013_v38, %v921_v30  ;;  %v1003_v56 = vadd.f32 %v994_v2, %v963_v35 }
 0x251   : > { %v1015_v6 = vmul.f32 %v2145_v9, %v1003_v56  ;;  %v1026_v41 = vpack.c.bf16 %v1021_v55, %v1020_v39 }
 0x253   : > { %v1023_v48 = vadd.f32 %v1015_v6, %v923_v23  ;;  %1525 = vmatprep.mubr.bf16.mxu1 %v1026_v41 }
 0x255   : > { %v1027_v45 = vpack.c.bf16 %v1023_v48, %v1022_v58 }
 0x257   : > { %1526 = vmatmul.mubr.bf16.vlgmr.msra.gmra.mrb[8].mxu1 %v1027_v45 }
 0x2c6   : > { %v1523_v43 = vpop.f32.mrb[8].mxu0 }
 0x2c7   : > { %v1142_v9 = vpop.f32.mrb[9].mxu0  ;;  %v1151_v58 = vadd.f32 %v1523_v43, %v1385_v25 }
 0x2c8   : > { %v1524_v59 = vpop.f32.mrb[10].mxu0  ;;  %v1143_v63 = vadd.f32 %v1381_v50, %v1142_v9 }
 0x2c9   : > { %v1154_v60 = vadd.f32 %v1524_v59, %v1386_v27  ;;  %v1145_v61 = vpop.f32.mrb[11].mxu0 }
 0x2ca   : > { %v1146_v51 = vadd.f32 %v1382_v49, %v1145_v61 }
 0x2cb   : > { %v1403_v53 = vpack.c.bf16 %v1154_v60, %v1151_v58 }
 0x2cc   : > { %v1398_v0 = vpack.c.bf16 %v1146_v51, %v1143_v63 }
 0x2cd   : > { %1418 = vst [vmem:[%s258_s7 + $0x8] sm:$0xff] %v1403_v53  }
 0x2ce   : > { %1399 = vst [vmem:[%s258_s7] sm:$0xff] %v1398_v0  }
 0x32a   : > { %v1527_v3 = vpop.f32.mrb[8].mxu1 }
 0x32b   : > { %v1158_v10 = vpop.f32.mrb[9].mxu1  ;;  %v1167_v11 = vadd.f32 %v1527_v3, %v1393_v1 }
 0x32c   : > { %v1528_v5 = vpop.f32.mrb[10].mxu1  ;;  %v1159_v54 = vadd.f32 %v1389_v8, %v1158_v10 }
 0x32d   : > { %v1170_v12 = vadd.f32 %v1528_v5, %v1394_v4  ;;  %v1161_v16 = vpop.f32.mrb[11].mxu1 }
 0x32e   : > { %v1162_v17 = vadd.f32 %v1390_v13, %v1161_v16 }
 0x32f   : > { %v1413_v24 = vpack.c.bf16 %v1170_v12, %v1167_v11 }
 0x330   : > { %v1408_v26 = vpack.c.bf16 %v1162_v17, %v1159_v54 }
 0x331   : > { %1420 = vst [vmem:[%s258_s7 + $0x18] sm:$0xff] %v1413_v24  }
 0x332   : > { %1419 = vst [vmem:[%s258_s7 + $0x10] sm:$0xff] %v1408_v26  }
 0x333   : > { %1717 = shalt.err (!%p1714_p5)
}
 0x334   : > { %s1718_s27 = scalar_lea.hbm %s2224_s16, 512  ;;  %s1722_s9 = scalar_lea.hbm %s2279_s5, 1024 }
 0x335   : > { %p1719_p6 = scmp.ne.s32.totalorder %s2224_s16, %s1718_s27  ;;  %p1723_p10 = scmp.lt.u32.totalorder %s2224_s16, %s2279_s5 }
 0x336   : > { %p1724_p11 = scmp.lt.u32.totalorder %s1722_s9, %s1718_s27  ;;  %p1726_p13 = scmp.lt.u32.totalorder %s1718_s27, %s2224_s16 }
 0x337   : > { %p1720_p7 = pnand %p1719_p6, %p1861_p4 }
 0x338   : > { %p1725_p12 = por %p1724_p11, %p1723_p10 }
 0x339   : > { %p1721_p9 = pneg %p1720_p7 }
 0x33a   : > { %p1727_p0 = por %p1726_p13, %p1725_p12 }
 0x33c   : > { %p1728_p1 = pnand %p1727_p0, %p1721_p9 }
 0x33e   : > { %1731 = shalt.err (!%p1728_p1)
}
 0x33f   : > { %s1789_s13 = smov 64   ;;  %s1790_s14 = smov 4  }
 0x340   : > { %1545 = dma.vmem_to_hbm [thread:$0]  (%p1861_p4), %s2219_s12, 512, %s2224_s16, %s2228_s21, %s1789_s13, %s1789_s13, %s1790_s14  }
 0x341 PF: > { %p1551_p2 = scmp.ge.s32.totalorder %s1782_s23, 2  ;;  %s1244_s15 = sand.u32 1, %s1762_s18  }
 0x342   : > { %s1245_s17 = scalar_lea.sflag [#allocation3], %s1244_s15 }
 0x343   : > { %p1548_p3 = pnand %p1551_p2, %p1868_p8 }
 0x345   : > { %1757 = dma.done.wait (!%p1548_p3), %s1245_s17, 512  }
 0x346   : > { %1759 = vsyncadd (!%p1548_p3), %s1245_s17, 4294966784  ;;  %s18_s23 = sadd.s32 1, %s1782_s23   ;;  %s2282_s18 = smov %s1766_s19 }
 0x347   : > { %p15_p5 = scmp.ge.s32.totalorder %s18_s23, 4   ;;  %s2283_s19 = smov %s1770_s20 }
 0x348   : > { %s2284_s20 = smov %s1874_s6  ;;  %s2285_s21 = smov %s1778_s22 }
 0x349   : > { %s2286_s22 = smov %s2288_s26  ;;  %17 = sbr.rel (!%p15_p5) target bundleno = 4 (0x4), region = 78 }
 0x350   :  { %1250 = vsyncpa [#allocation3], 1 }
 0x351   :  { %1252 = vsyncpa [#allocation3 + $0x1], 1 }

</bundles_post_ra>
